<compile_context>
chip_gen: v7x
topology: tpu7x:2x2x1
jax: 0.10.0
libtpu: 0.0.40
codegen_flags: <defaults>
</compile_context>

<pallas_src>
import math
from functools import partial

import numpy as np
import jax
import jax.numpy as jnp
from jax.experimental import pallas as pl
from jax.experimental.pallas import tpu as pltpu

F32 = jnp.float32
BF16 = jnp.bfloat16


# -------------------------------------------------------------------------
# VMEM budget: ~3/4 of physical, capped at 96 MiB (generation-aware).
# -------------------------------------------------------------------------
def _vmem_limit_bytes():
    cap = None
    try:
        cap = getattr(pltpu.get_tpu_info(), "vmem_capacity_bytes", None)
    except Exception:
        cap = None
    if not cap:
        return 48 * 1024 * 1024           # safe everywhere (incl. v7x 64 MiB)
    return int(min(cap * 3 // 4, 96 * 1024 * 1024))


def _pick_row_tile(rows):
    for tm in (512, 256, 128, 64, 32, 16, 8):
        if rows % tm == 0:
            return tm
    return rows


# -------------------------------------------------------------------------
# Kernel 1: positional projection  p = pos_enc @ Wp   (computed once, no grid)
# -------------------------------------------------------------------------
def pos_proj_kernel(pe_ref, wp_ref, p_ref):
    p_ref[...] = jnp.dot(pe_ref[...], wp_ref[...],
                         preferred_element_type=F32).astype(BF16)


# -------------------------------------------------------------------------
# Kernel 2: LayerNorm + fused Q|K|V projection over flattened B*T rows.
# -------------------------------------------------------------------------
def ln_qkv_kernel(x_ref, g_ref, b_ref, w_ref, bias_ref, q_ref, k_ref, v_ref, *, d_att):
    x = x_ref[...]                                            # (TM, D) f32
    mean = jnp.mean(x, axis=-1, keepdims=True)
    var = jnp.mean((x - mean) ** 2, axis=-1, keepdims=True)
    xh = (x - mean) * jax.lax.rsqrt(var + 1e-5)
    xh = xh * g_ref[...] + b_ref[...]

    qkv = jnp.dot(xh.astype(BF16), w_ref[...],
                  preferred_element_type=F32) + bias_ref[...]     # (TM, 3*Da) f32
    q_ref[...] = qkv[:, :d_att].astype(BF16)
    k_ref[...] = qkv[:, d_att:2 * d_att].astype(BF16)
    v_ref[...] = qkv[:, 2 * d_att:].astype(BF16)


# -------------------------------------------------------------------------
# Transformer-XL relative shift (exact replica of the pad->reshape trick):
#   result[i, j] = P[i,   T-1+j-i]   for j <= i
#                = 0                 for j == i+1
#                = P[i+1, j-i-2]     for j >= i+2
# Fallback path for T not a multiple of 128 (small sanity shapes): log2(T)
# conditional uniform rotations built from static slices + select.
# -------------------------------------------------------------------------
def _rows_rotate_right(x, amounts, t):
    out = x
    bit = 1
    while bit < t:
        rolled = jnp.concatenate([out[:, t - bit:], out[:, :t - bit]], axis=1)
        out = jnp.where((amounts & bit) != 0, rolled, out)
        bit *= 2
    return out


# -------------------------------------------------------------------------
# Kernel 3: fused attention for one (batch, query-tile).  grid=(B, T//TQ)
#   content/pos scores -> relative shift -> mask -> softmax -> context -> out-proj
# -------------------------------------------------------------------------
def attention_kernel(q_ref, k_ref, v_ref, p_ref, ub_ref, vb_ref, m_ref,
                     wo_ref, bo_ref, out_ref, attn_ref, ctx_ref, *,
                     num_heads, d_head, inv_sqrt_dim, tq, t, num_q_tiles, use_roll):
    fix_boundary = num_q_tiles > 1

    if num_q_tiles > 1:
        q0 = pl.multiple_of(pl.program_id(1) * tq, tq)
        q_blk = q_ref[pl.ds(q0, tq), :]                       # (TQ, Da) bf16
        # first query row of the NEXT tile (needed by the relative shift at the
        # tile boundary); clamped and provably unused for the last tile.
        b_idx = jnp.minimum(q0 + tq, t - 1)
        q_bnd = q_ref[pl.ds(b_idx, 1), :]                     # (1, Da) bf16
    else:
        q0 = 0
        q_blk = q_ref[...]
        q_bnd = None

    # Hoisted (once per step, not per head) bias adds / casts on the lane-dense slab.
    q_f32 = q_blk.astype(F32)
    q_u = (q_f32 + ub_ref[...]).astype(BF16)                  # (TQ, Da)
    q_v = (q_f32 + vb_ref[...]).astype(BF16)
    if fix_boundary:
        q_vb = (q_bnd.astype(F32) + vb_ref[...]).astype(BF16)  # (1, Da)

    k = k_ref[...]                                            # (T, Da) bf16
    v = v_ref[...]
    p = p_ref[...]

    # Additive key mask, computed once; broadcasts inside the per-head add.
    mask_add = jnp.where(m_ref[...] != 0, jnp.float32(-1e30), jnp.float32(0.0))

    row = jax.lax.broadcasted_iota(jnp.int32, (tq, t), 0)     # local query row
    col = jax.lax.broadcasted_iota(jnp.int32, (tq, t), 1)     # key column
    row_abs = row + q0                                        # absolute query row
    if not use_roll:
        amt_a = (row + 1) % t
        amt_b = (row + 2) % t

    dn = (((1,), (1,)), ((), ()))                             # A @ B^T on feature dim
    # NOTE: heads stay a static unroll so the output projection remains fused in
    # this kernel; per-head temporaries die at the attn_ref / ctx scratch stores.
    for h in range(num_heads):
        lo, hi = h * d_head, (h + 1) * d_head
        kh = k[:, lo:hi]
        vh = v[:, lo:hi]
        ph = p[:, lo:hi]

        content = jax.lax.dot_general(q_u[:, lo:hi], kh, dn, preferred_element_type=F32)
        pscore = jax.lax.dot_general(q_v[:, lo:hi], ph, dn, preferred_element_type=F32)

        if use_roll:
            # gather_a[r, j] = pscore[r, (j - (q0+r+1)) mod T]  (one strided XLU roll)
            ga = pltpu.roll(pscore, shift=1, axis=1, stride=1, stride_axis=0)
            # rows shifted up by one: row r <- query q0+r+1 (fix tile-boundary row)
            pup = pltpu.roll(pscore, shift=tq - 1, axis=0)
            if fix_boundary:
                psb = jax.lax.dot_general(q_vb[:, lo:hi], ph, dn,
                                          preferred_element_type=F32)   # (1, T)
                pup = jnp.where(row == tq - 1, psb, pup)
            # gather_b[r, j] = P[q0+r+1, (j - (q0+r+2)) mod T]
            gb = pltpu.roll(pup, shift=2, axis=1, stride=1, stride_axis=0)
            if num_q_tiles > 1:
                ga = pltpu.roll(ga, shift=q0, axis=1)
                gb = pltpu.roll(gb, shift=q0, axis=1)
        else:
            ga = _rows_rotate_right(pscore, amt_a, t)
            pup = jnp.concatenate([pscore[1:, :], pscore[:1, :]], axis=0)
            gb = _rows_rotate_right(pup, amt_b, t)

        pshift = jnp.where(col <= row_abs, ga,
                           jnp.where(col == row_abs + 1, jnp.float32(0.0), gb))

        score = (content + pshift) * inv_sqrt_dim + mask_add
        smax = jnp.max(score, axis=-1, keepdims=True)
        # TODO(synk): on v6e/v7x a bf16 exp roughly doubles EUP throughput; kept f32.
        e = jnp.exp(score - smax)
        denom = jnp.sum(e, axis=-1, keepdims=True)
        attn = (e * pl.reciprocal(denom)).astype(BF16)        # exact: attn is returned

        attn_ref[h, :, :] = attn
        ctx_ref[:, lo:hi] = jnp.dot(attn, vh, preferred_element_type=F32).astype(BF16)

    out_ref[...] = jnp.dot(ctx_ref[...], wo_ref[...],
                           preferred_element_type=F32) + bo_ref[...]


# -------------------------------------------------------------------------
# Wrapper
# -------------------------------------------------------------------------
def sinusoidal_pe(T, D):
    pos = jnp.arange(T, dtype=F32)[:, None]
    div = jnp.exp(jnp.arange(0, D, 2, dtype=F32) * (-math.log(10000.0) / D))
    pe = jnp.zeros((T, D), F32)
    pe = pe.at[:, 0::2].set(jnp.sin(pos * div))
    pe = pe.at[:, 1::2].set(jnp.cos(pos * div))
    return pe


def multi_headed_self_attention(x, mask, params, *, num_heads):
    B, T, D = x.shape
    Da = params["wq"].shape[1]
    H = num_heads
    dh = Da // H
    vmem = _vmem_limit_bytes()

    pe = sinusoidal_pe(T, D).astype(BF16)
    w_qkv = jnp.concatenate([params["wq"], params["wk"], params["wv"]], axis=1).astype(BF16)
    b_qkv = jnp.concatenate([params["bq"], params["bk"], params["bv"]], axis=1)
    wp = params["wp"].astype(BF16)
    wo = params["wo"].astype(BF16)
    u_row = params["u_bias"].reshape(1, Da)          # head-concatenated bias rows
    v_row = params["v_bias"].reshape(1, Da)

    # ---- kernel 1: positional projection (once; shared across batch) -------
    p = pl.pallas_call(
        pos_proj_kernel,
        out_shape=jax.ShapeDtypeStruct((T, Da), BF16),
        compiler_params=pltpu.CompilerParams(vmem_limit_bytes=vmem),
    )(pe, wp)

    # ---- kernel 2: LayerNorm + fused QKV over flattened B*T rows -----------
    rows = B * T
    TM = _pick_row_tile(rows)
    x2 = x.reshape(rows, D)
    q2, k2, v2 = pl.pallas_call(
        partial(ln_qkv_kernel, d_att=Da),
        grid=(rows // TM,),
        in_specs=[
            pl.BlockSpec((TM, D), lambda i: (i, 0)),           # x rows
            pl.BlockSpec((1, D), lambda i: (0, 0)),            # ln gamma
            pl.BlockSpec((1, D), lambda i: (0, 0)),            # ln beta
            pl.BlockSpec((D, 3 * Da), lambda i: (0, 0)),       # W_qkv
            pl.BlockSpec((1, 3 * Da), lambda i: (0, 0)),       # b_qkv
        ],
        out_specs=[pl.BlockSpec((TM, Da), lambda i: (i, 0))] * 3,
        out_shape=[jax.ShapeDtypeStruct((rows, Da), BF16)] * 3,
        compiler_params=pltpu.CompilerParams(
            dimension_semantics=("parallel",), vmem_limit_bytes=vmem),
        cost_estimate=pl.CostEstimate(
            flops=2 * rows * D * 3 * Da + 10 * rows * D,
            transcendentals=0,
            bytes_accessed=rows * D * 4 + D * 3 * Da * 2 + 3 * rows * Da * 2),
    )(x2, params["ln_g"], params["ln_b"], w_qkv, b_qkv)
    q = q2.reshape(B, T, Da)
    k = k2.reshape(B, T, Da)
    v = v2.reshape(B, T, Da)

    # key mask in its native (B,1,T) (or (B,T,T)) form, int32, nonzero = masked.
    if mask is None:
        mask_arr = jnp.zeros((B, 1, T), jnp.int32)
    else:
        mask_arr = mask.astype(jnp.int32)
        if mask_arr.ndim == 2:
            mask_arr = mask_arr[:, None, :]
    Tm = mask_arr.shape[1]

    # ---- kernel 3: fused scores + shift + softmax + context + out-proj -----
    use_roll = (T % 128 == 0)                 # strided XLU-roll relative shift
    TQ = 128 if (use_roll and T > 128) else T  # query tile (v7x VMEM-safe)
    NQ = T // TQ

    if Tm == 1:
        mask_spec = pl.BlockSpec((None, 1, T), lambda b, qi: (b, 0, 0))
    else:
        mask_spec = pl.BlockSpec((None, TQ, T), lambda b, qi: (b, qi, 0))

    flops = B * H * 6 * T * T * dh + 2 * B * T * Da * D
    bytes_acc = (3 * B * T * Da * 2 + T * Da * 2 + B * H * T * T * 2
                 + B * T * D * 4 + Da * D * 2 + B * Tm * T * 4)

    out, attn = pl.pallas_call(
        partial(attention_kernel, num_heads=H, d_head=dh,
                inv_sqrt_dim=1.0 / math.sqrt(D),
                tq=TQ, t=T, num_q_tiles=NQ, use_roll=use_roll),
        grid=(B, NQ),
        in_specs=[
            pl.BlockSpec((None, T, Da), lambda b, qi: (b, 0, 0)),   # q (resident)
            pl.BlockSpec((None, T, Da), lambda b, qi: (b, 0, 0)),   # k (resident)
            pl.BlockSpec((None, T, Da), lambda b, qi: (b, 0, 0)),   # v (resident)
            pl.BlockSpec((T, Da), lambda b, qi: (0, 0)),            # pos projection
            pl.BlockSpec((1, Da), lambda b, qi: (0, 0)),            # u bias row
            pl.BlockSpec((1, Da), lambda b, qi: (0, 0)),            # v bias row
            mask_spec,                                              # key mask
            pl.BlockSpec((Da, D), lambda b, qi: (0, 0)),            # Wo
            pl.BlockSpec((1, D), lambda b, qi: (0, 0)),             # bo
        ],
        out_specs=[pl.BlockSpec((None, TQ, D), lambda b, qi: (b, qi, 0)),
                   pl.BlockSpec((None, H, TQ, T), lambda b, qi: (b, 0, qi, 0))],
        out_shape=[jax.ShapeDtypeStruct((B, T, D), F32),
                   jax.ShapeDtypeStruct((B, H, T, T), BF16)],       # bf16 attn map
        scratch_shapes=[pltpu.VMEM((TQ, Da), BF16)],                # ctx scratch
        compiler_params=pltpu.CompilerParams(
            dimension_semantics=("parallel", "parallel"), vmem_limit_bytes=vmem),
        cost_estimate=pl.CostEstimate(flops=flops, transcendentals=B * H * T * T,
                                      bytes_accessed=bytes_acc),
    )(q, k, v, p, u_row, v_row, mask_arr, wo, params["bo"])

    # TODO(synk): nn.Dropout (attention + output) is identity in eval mode; skipped.
    return out, attn


# -------------------------------------------------------------------------
# Deterministic parameter init (xavier-uniform weights, zero biases)
# -------------------------------------------------------------------------
def init_params(key, d_model, d_attention, num_heads):
    dh = d_attention // num_heads
    ks = jax.random.split(key, 7)

    def xavier(k, shape):
        limit = math.sqrt(6.0 / (shape[0] + shape[1]))
        return jax.random.uniform(k, shape, F32, -limit, limit)

    z = lambda s: jnp.zeros(s, F32)
    return dict(
        ln_g=jnp.ones((1, d_model), F32), ln_b=z((1, d_model)),
        wq=xavier(ks[0], (d_model, d_attention)), bq=z((1, d_attention)),
        wk=xavier(ks[1], (d_model, d_attention)), bk=z((1, d_attention)),
        wv=xavier(ks[2], (d_model, d_attention)), bv=z((1, d_attention)),
        wp=xavier(ks[3], (d_model, d_attention)),
        u_bias=xavier(ks[4], (num_heads, dh)),
        v_bias=xavier(ks[5], (num_heads, dh)),
        wo=xavier(ks[6], (d_attention, d_model)), bo=z((1, d_model)),
    )


# -------------------------------------------------------------------------
# Pure-JAX reference (mirrors the PyTorch forward) for verification
# -------------------------------------------------------------------------
def reference(x, mask, params, num_heads):
    B, T, D = x.shape
    Da = params["wq"].shape[1]
    H, dh = num_heads, Da // num_heads
    pe = jnp.broadcast_to(sinusoidal_pe(T, D), (B, T, D))
    mean = x.mean(-1, keepdims=True)
    var = ((x - mean) ** 2).mean(-1, keepdims=True)
    xh = (x - mean) / jnp.sqrt(var + 1e-5) * params["ln_g"][0] + params["ln_b"][0]
    q = (xh @ params["wq"] + params["bq"]).reshape(B, T, H, dh)
    k = (xh @ params["wk"] + params["bk"]).reshape(B, T, H, dh).transpose(0, 2, 1, 3)
    v = (xh @ params["wv"] + params["bv"]).reshape(B, T, H, dh).transpose(0, 2, 1, 3)
    p = (pe @ params["wp"]).reshape(B, T, H, dh)
    content = (q + params["u_bias"]).transpose(0, 2, 1, 3) @ k.transpose(0, 1, 3, 2)
    pos_score = (q + params["v_bias"]).transpose(0, 2, 1, 3) @ p.transpose(0, 2, 3, 1)
    zeros = jnp.zeros((B, H, T, 1), F32)
    padded = jnp.concatenate([zeros, pos_score], -1).reshape(B, H, T + 1, T)
    pos_score = padded[:, :, 1:].reshape(B, H, T, T)
    score = (content + pos_score) / math.sqrt(D)
    if mask is not None:
        score = jnp.where(mask[:, None], -jnp.inf, score)
    attn = jax.nn.softmax(score, -1)
    ctx = (attn @ v).transpose(0, 2, 1, 3).reshape(B, T, Da)
    return ctx @ params["wo"] + params["bo"], attn


# -------------------------------------------------------------------------
if __name__ == "__main__":
    def run_case(B, T, D, Da, H, lengths, seed):
        key = jax.random.PRNGKey(seed)
        kx, kp = jax.random.split(key)
        x = jax.random.normal(kx, (B, T, D), F32)
        # mask: (batch, 1, time), True = position to be masked out
        mask = jnp.arange(T)[None, None, :] >= jnp.asarray(lengths)[:, None, None]
        params = init_params(kp, D, Da, H)

        out, attn = multi_headed_self_attention(x, mask, params, num_heads=H)
        jax.block_until_ready((out, attn))

        ref_out, ref_attn = reference(x, mask, params, H)
        # bf16 matmul inputs / bf16 attn map with f32 accumulation -> loose tolerances
        np.testing.assert_allclose(np.asarray(out), np.asarray(ref_out),
                                   rtol=7e-2, atol=7e-2)
        np.testing.assert_allclose(np.asarray(attn.astype(F32)), np.asarray(ref_attn),
                                   rtol=3e-2, atol=3e-2)

    # Small shape: exercises the generic (concat-based) relative-shift path.
    run_case(B=2, T=8, D=32, Da=32, H=4, lengths=[8, 6], seed=0)
    # Lane-aligned shape: exercises the pltpu.roll relative shift + query tiling
    # (TQ=128 -> 2 query tiles per batch, incl. the cross-tile boundary fix).
    run_case(B=2, T=256, D=64, Da=64, H=4, lengths=[256, 200], seed=1)

    print("KERNEL_OK")
</pallas_src>

<mosaic_0001>
module attributes {stable_mosaic.version = 11 : i64} {
  func.func @pos_proj_kernel(%arg0: memref<8x32xbf16, #tpu.memory_space<vmem>>, %arg1: memref<32x32xbf16, #tpu.memory_space<vmem>>, %arg2: memref<8x32xbf16, #tpu.memory_space<vmem>>) attributes {dimension_semantics = [], scalar_prefetch = 0 : i64, scratch_operands = 0 : i64, tpu.core_type = #tpu.core_type<tc>} {
    %c0 = arith.constant 0 : index
    %c0_0 = arith.constant 0 : index
    %0 = vector.load %arg0[%c0, %c0_0] : memref<8x32xbf16, #tpu.memory_space<vmem>>, vector<8x32xbf16>
    %c0_1 = arith.constant 0 : index
    %c0_2 = arith.constant 0 : index
    %1 = vector.load %arg1[%c0_1, %c0_2] : memref<32x32xbf16, #tpu.memory_space<vmem>>, vector<32x32xbf16>
    %cst = arith.constant dense<0.000000e+00> : vector<8x32xf32>
    %2 = tpu.matmul %0, %1, %cst {dimension_numbers = #tpu.dot_dimension_numbers<[1], [0], [0], [1], [0, 0, 1, 1], [], []>} : vector<8x32xbf16>, vector<32x32xbf16>, vector<8x32xf32> -> vector<8x32xf32>
    %3 = arith.truncf %2 : vector<8x32xf32> to vector<8x32xbf16>
    %c0_3 = arith.constant 0 : index
    %c0_4 = arith.constant 0 : index
    %4 = vector.load %arg2[%c0_3, %c0_4] : memref<8x32xbf16, #tpu.memory_space<vmem>>, vector<8x32xbf16>
    tpu.vector_store %arg2[%c0_3, %c0_4], %3 {strides = array<i32>} : memref<8x32xbf16, #tpu.memory_space<vmem>>, vector<8x32xbf16>,
    return
  }
}

</mosaic_0001>

<bundles_post_ra>
// kernel: tpu_custom_call.1
= control target key start
LH: loop header
LB: loop body
LE: loop exit
PB: predicated region body
PF: predicated region fallthrough
CT: control target
= control target key end

     0   :  { %7 = vsyncpa [#allocation3], 0  ;;  %s279_s0 = inlined_call_operand.hbm [shape: bf16[8,32], index: 0, kind: input, shape index: {}]   ;;  %s280_s1 = inlined_call_operand.hbm [shape: bf16[32,32], index: 1, kind: input, shape index: {}]   ;;  %s281_s2 = inlined_call_operand.hbm [shape: bf16[8,32], index: 2, kind: output, shape index: {}]  }
   0x1   :  { %8 = vsyncpa [#allocation6], 0 }
   0x2   :  { %9 = vsyncpa [#allocation4], 0  ;;  %s214_s9 = smov [#allocation2]   ;;  %s215_s11 = smov [#allocation5]  }
   0x3   :  { %s16_s10 = sshll.u32 %s214_s9, 4  ;;  %s25_s12 = sshll.u32 %s215_s11, 4  ;;  %s17_s10 = int_to_ptr.vmem [resolvable:$true] %s16_s10  ;;  %s236_s12 = int_to_ptr.vmem [resolvable:$true] %s25_s12 }
   0x4   :  { %s142_s15 = scalar_lea.hbm %s279_s0, 64 }
   0x5   :  { %p143_p0 = scmp.ne.s32.totalorder %s279_s0, %s142_s15  ;;  %p146_p1 = scmp.lt.u32.totalorder %s142_s15, %s279_s0 }
   0x7   :  { %p148_p2 = pnand %p146_p1, %p143_p0 }
   0x9   :  { %151 = shalt.err (!%p148_p2)
}
   0xa   :  { %s152_s20 = scalar_lea.vmem %s17_s10, 64  ;;  %p157_p4 = scmp.lt.s32.totalorder %s17_s10, %s17_s10 }
   0xb   :  { %p153_p3 = scmp.ne.s32.totalorder %s17_s10, %s152_s20  ;;  %p158_p5 = scmp.lt.s32.totalorder %s152_s20, %s152_s20 }
   0xd   :  { %p159_p6 = por %p158_p5, %p157_p4 }
   0xf   :  { %p160_p7 = pnand %p159_p6, %p153_p3 }
  0x11   :  { %163 = shalt.err (!%p160_p7)
}
  0x12   :  { %19 = dma.hbm_to_vmem [thread:$0]  %s279_s0, 64, %s17_s10, [#allocation3]  }
  0x13   :  { %s164_s25 = scalar_lea.hbm %s280_s1, 256 }
  0x14   :  { %p165_p8 = scmp.ne.s32.totalorder %s280_s1, %s164_s25  ;;  %p168_p9 = scmp.lt.u32.totalorder %s164_s25, %s280_s1 }
  0x16   :  { %p170_p10 = pnand %p168_p9, %p165_p8 }
  0x18   :  { %173 = shalt.err (!%p170_p10)
}
  0x19   :  { %s174_s30 = scalar_lea.vmem %s236_s12, 256  ;;  %p179_p12 = scmp.lt.s32.totalorder %s236_s12, %s236_s12 }
  0x1a   :  { %p175_p11 = scmp.ne.s32.totalorder %s236_s12, %s174_s30  ;;  %p180_p13 = scmp.lt.s32.totalorder %s174_s30, %s174_s30 }
  0x1c   :  { %p181_p0 = por %p180_p13, %p179_p12 }
  0x1e   :  { %p182_p1 = pnand %p181_p0, %p175_p11 }
  0x20   :  { %185 = shalt.err (!%p182_p1)
}
  0x21   :  { %s216_s0 = smov 64   ;;  %s217_s3 = smov 4  }
  0x22   :  { %31 = dma.hbm_to_vmem [thread:$0]  %s280_s1, 256, %s236_s12, [#allocation6], %s216_s0, %s216_s0, %s217_s3  }
  0x23   :  { %208 = dma.done.wait [#allocation3], 64  }
  0x24   :  { %209 = vsyncadd [#allocation3], 4294967232 }
  0x25   :  { %210 = dma.done.wait [#allocation6], 256  }
  0x26   :  { %211 = vsyncadd [#allocation6], 4294967040  ;;  %v218_v0 = vmov 0.0   ;;  %vm219_vm0 = vmmov 0   ;;  %v140_v1 = vld [vmem:[#allocation5] sm:$0xff]   ;;  %v141_v2 = vld [vmem:[#allocation5 + $0x8] sm:$0xff]  }
  0x27   :  { %125 = vmatprep.subr.bf16.mxu0 %v218_v0  ;;  %129 = vmatprep.mubr.msk.bf16.mxu0 %vm219_vm0, %v218_v0  ;;  %v39_v3 = vld [vmem:[#allocation2] sm:$0xf]  ;;  %vm56_vm1 = vcmask 261120   ;;  %s220_s6 = smov [#allocation7]   ;;  %vm101_vm2 = vcmask 257024  }
  0x28   :  { %126 = vmatpush3.bf16.msra.mxu0 %v140_v1  ;;  %s109_s7 = sshll.u32 %s220_s6, 4  ;;  %s110_s7 = int_to_ptr.vmem [resolvable:$true] %s109_s7 }
  0x29   :  { %127 = vmatprep.subr.bf16.mxu0 %v218_v0  ;;  %s186_s1 = scalar_lea.vmem %s110_s7, 64  ;;  %p191_p3 = scmp.lt.s32.totalorder %s110_s7, %s110_s7 }
  0x2a   :  { %p187_p2 = scmp.ne.s32.totalorder %s110_s7, %s186_s1  ;;  %p192_p4 = scmp.lt.s32.totalorder %s186_s1, %s186_s1 }
  0x2c   :  { %128 = vmatpush3.bf16.msra.mxu0 %v141_v2  ;;  %p193_p5 = por %p192_p4, %p191_p3 }
  0x2e   :  { %p194_p6 = pnand %p193_p5, %p187_p2 }
  0x2f   :  { %130 = vmatmul.mubr.msk.bf16.vlgmr.msra.gmra.mrb[0].mxu0 %vm56_vm1, %v39_v3 }
 0x102   :  { %v94_v4 = vpop.f32.mrb[0].mxu0 }
 0x103   :  { %v100_v5 = vpack.c.bf16 %v94_v4, %v94_v4  ;;  %v131_v6 = vpop.f32.mrb[1].mxu0 }
 0x104   :  { %v97_v7 = vpop.f32.mrb[2].mxu0 }
 0x105   :  { %v132_v8 = vpop.f32.mrb[3].mxu0  ;;  %102 = vst.msk [vmem:[#allocation7] sm:$0xf] %vm101_vm2, %v100_v5 }
 0x106   :  { %197 = shalt.err (!%p194_p6)
}
 0x107   :  { %s198_s10 = scalar_lea.hbm %s281_s2, 64 }
 0x108   :  { %p199_p7 = scmp.ne.s32.totalorder %s281_s2, %s198_s10  ;;  %p202_p8 = scmp.lt.u32.totalorder %s198_s10, %s281_s2 }
 0x10a   :  { %p204_p9 = pnand %p202_p8, %p199_p7 }
 0x10c   :  { %207 = shalt.err (!%p204_p9)
}
 0x10d   :  { %112 = dma.vmem_to_hbm [thread:$0]  %s110_s7, 64, %s281_s2, [#allocation4]  }
 0x10e   :  { %212 = dma.done.wait [#allocation4], 64  }
 0x10f   :  { %213 = vsyncadd [#allocation4], 4294967232 }
 0x110   :  { %116 = vsyncpa [#allocation3], 1 }
 0x111   :  { %117 = vsyncpa [#allocation6], 1 }
 0x112   :  { %118 = vsyncpa [#allocation4], 1 }

</bundles_post_ra>
